<compile_context>
chip_gen: v7x
topology: tpu7x:2x2x1
jax: 0.10.0
libtpu: 0.0.40
codegen_flags: <defaults>
</compile_context>

<pallas_src>
import functools

import jax
import jax.numpy as jnp
from jax import lax
from jax.experimental import pallas as pl
from jax.experimental.pallas import tpu as pltpu


def _round_up(n, m):
    return ((n + m - 1) // m) * m


# ----------------------------------------------------------------------------
# Pallas kernel: fused (W @ patches^T) + bias (+ ReLU / sigmoid), lane-dense.
# ----------------------------------------------------------------------------
def _matmul_bias_act_kernel(w_ref, x_ref, b_ref, o_ref, *, activation):
    # w_ref: (N, K) bf16 (resident), x_ref: (K, TM) bf16, b_ref: (N, 1) f32.
    acc = jnp.dot(w_ref[...], x_ref[...], preferred_element_type=jnp.float32)
    acc = acc + b_ref[...]                      # (N,1) broadcast over lanes
    if activation == "relu":
        acc = jnp.maximum(acc, 0.0)
    elif activation == "sigmoid":
        acc = 1.0 / (1.0 + jnp.exp(-acc))
    o_ref[...] = acc.astype(o_ref.dtype)


def fused_matmul(w_nk, x_km, b, activation, out_dtype, tile_m=512):
    """w_nk: (N, K), x_km: (K, M), b: (N,)  ->  (N, M) with bias+activation."""
    N, K = w_nk.shape
    _, M = x_km.shape

    # Lane-dense tiling over M: tile is a multiple of 128 lanes (<= tile_m).
    tm = min(tile_m, _round_up(M, 128))
    m_pad = _round_up(M, tm)
    if m_pad != M:
        x_km = jnp.pad(x_km, ((0, 0), (0, m_pad - M)))   # explicit zero pad
    grid = (m_pad // tm,)

    kern = functools.partial(_matmul_bias_act_kernel, activation=activation)
    bytes_accessed = (
        K * m_pad * 2                                   # bf16 patch reads
        + N * K * 2 + N * 4                             # weights + bias
        + N * m_pad * jnp.dtype(out_dtype).itemsize)    # output writes
    out = pl.pallas_call(
        kern,
        out_shape=jax.ShapeDtypeStruct((N, m_pad), out_dtype),
        grid=grid,
        in_specs=[
            pl.BlockSpec((N, K), lambda i: (0, 0)),     # weights: resident
            pl.BlockSpec((K, tm), lambda i: (0, i)),    # patch tile (lanes = M)
            pl.BlockSpec((N, 1), lambda i: (0, 0)),     # bias: resident
        ],
        out_specs=pl.BlockSpec((N, tm), lambda i: (0, i)),
        compiler_params=pltpu.CompilerParams(
            dimension_semantics=("parallel",)),
        cost_estimate=pl.CostEstimate(
            flops=2 * N * K * m_pad,
            transcendentals=(N * m_pad if activation == "sigmoid" else 0),
            bytes_accessed=bytes_accessed),
    )(w_nk, x_km, b.reshape(N, 1).astype(jnp.float32))
    return out[:, :M]


# ----------------------------------------------------------------------------
# ConvTranspose2d(k=4, stride=2, pad=1) via sub-pixel (parity) decomposition.
# ----------------------------------------------------------------------------
def conv_transpose_4x4_s2_p1(x_nchw, w, b, activation, out_dtype):
    """x: (B, Cin, H, W); w: (Cin, Cout, 4, 4) (PyTorch ConvTranspose layout);
    b: (Cout,).  Returns (B, Cout, 2H, 2W)."""
    B, Cin, H, W = x_nchw.shape
    Cout = w.shape[1]

    # Zero-pad spatially by 1; 2x2 patches at (H+1) x (W+1) positions.
    xp = jnp.pad(x_nchw, ((0, 0), (0, 0), (1, 1), (1, 1)))
    R, C = H + 1, W + 1

    # Patches in transposed (K, M) layout: K = (dh, dw, ci), M = (b, r, c).
    shards = [xp[:, :, dh:dh + R, dw:dw + C] for dh in range(2) for dw in range(2)]
    pt = jnp.stack(shards, axis=0)                              # (4, B, Cin, R, C)
    pt = pt.transpose(0, 2, 1, 3, 4).reshape(4 * Cin, B * R * C)
    pt = pt.astype(jnp.bfloat16)

    # Weight matrix (N, K): N = (p, q, co), K = (dh, dw, ci); tap = 3 - parity - 2*d.
    kmap = jnp.array([[3, 1], [2, 0]], dtype=jnp.int32)
    w6 = w[:, :, kmap, :][:, :, :, :, kmap]          # (Cin, Cout, p, dh, q, dw)
    wt = w6.transpose(2, 4, 1, 3, 5, 0).reshape(4 * Cout, 4 * Cin)
    wt = wt.astype(jnp.bfloat16)
    bt = jnp.tile(b, 4)                              # bias per (p, q, co)

    y = fused_matmul(wt, pt, bt, activation, out_dtype)         # (4*Cout, M)

    # Re-interleave the 4 parity outputs: out[b, co, 2i+p, 2j+q] = y[p,q,co,b,i+p,j+q]
    y = y.reshape(2, 2, Cout, B, R, C)
    y00 = y[0, 0, :, :, :H, :W]
    y01 = y[0, 1, :, :, :H, 1:]
    y10 = y[1, 0, :, :, 1:, :W]
    y11 = y[1, 1, :, :, 1:, 1:]
    row0 = jnp.stack([y00, y01], axis=-1)            # (Cout, B, H, W, 2[q])
    row1 = jnp.stack([y10, y11], axis=-1)
    inter = jnp.stack([row0, row1], axis=3)          # (Cout, B, H, 2[p], W, 2[q])
    out = inter.reshape(Cout, B, 2 * H, 2 * W).transpose(1, 0, 2, 3)
    return out


# ----------------------------------------------------------------------------
# Decoder forward (matches the PyTorch module semantics, NCHW in / NCHW out)
# ----------------------------------------------------------------------------
def decoder_forward(x_nchw, params):
    # conv2 (embedding -> hidden) + ReLU; keep intermediate in bf16.
    h = conv_transpose_4x4_s2_p1(x_nchw, params["w2"], params["b2"],
                                 activation="relu", out_dtype=jnp.bfloat16)
    # conv1 (hidden -> 1) + sigmoid; final output in f32.
    out = conv_transpose_4x4_s2_p1(h, params["w1"], params["b1"],
                                   activation="sigmoid", out_dtype=jnp.float32)
    return out


def init_params(key, embedding_dim, hidden_dim):
    """Deterministic init mimicking PyTorch uniform(-1/sqrt(fan), 1/sqrt(fan))."""
    ks = jax.random.split(key, 4)

    def u(k, shape, fan):
        bound = 1.0 / jnp.sqrt(float(fan))
        return jax.random.uniform(k, shape, jnp.float32, -bound, bound)

    return {
        # conv2 = ConvTranspose2d(embedding_dim, hidden_dim, 4, 2, 1) (applied first)
        "w2": u(ks[0], (embedding_dim, hidden_dim, 4, 4), embedding_dim * 16),
        "b2": u(ks[1], (hidden_dim,), embedding_dim * 16),
        # conv1 = ConvTranspose2d(hidden_dim, 1, 4, 2, 1) (applied second)
        "w1": u(ks[2], (hidden_dim, 1, 4, 4), hidden_dim * 16),
        "b1": u(ks[3], (1,), hidden_dim * 16),
    }


# ----------------------------------------------------------------------------
# Pure-JAX f32 reference (PyTorch-equivalent transposed convs)
# ----------------------------------------------------------------------------
def _conv_transpose_ref(x, w, b):
    # ConvTranspose2d(k=4, s=2, p=1) == dilated conv with flipped kernel, pad 2.
    k = jnp.flip(w, axis=(2, 3)).transpose(1, 0, 2, 3)     # (Cout, Cin, 4, 4)
    y = lax.conv_general_dilated(
        x, k, window_strides=(1, 1), padding=[(2, 2), (2, 2)],
        lhs_dilation=(2, 2), dimension_numbers=("NCHW", "OIHW", "NCHW"))
    return y + b.reshape(1, -1, 1, 1)


def decoder_ref(x, p):
    h = jax.nn.relu(_conv_transpose_ref(x, p["w2"], p["b2"]))
    return jax.nn.sigmoid(_conv_transpose_ref(h, p["w1"], p["b1"]))


if __name__ == "__main__":
    key = jax.random.PRNGKey(0)
    k_x, k_p = jax.random.split(key)

    B, embedding_dim, hidden_dim = 2, 4, 8
    H, W = 8, 8                                   # latent spatial size

    x = jax.random.normal(k_x, (B, embedding_dim, H, W), jnp.float32)
    params = init_params(k_p, embedding_dim, hidden_dim)

    out = jax.jit(decoder_forward)(x, params)
    out = jax.block_until_ready(out)

    ref = decoder_ref(x, params)
    assert out.shape == (B, 1, 4 * H, 4 * W), out.shape
    # bf16 operands / bf16 intermediate with f32 accumulation: loose-ish tolerance.
    assert jnp.allclose(out, ref, atol=2e-2, rtol=2e-2)

    print("KERNEL_OK")
</pallas_src>

<mosaic_0001>
module attributes {stable_mosaic.version = 11 : i64} {
  func.func @_matmul_bias_act_kernel(%arg0: i32, %arg1: memref<32x16xbf16, #tpu.memory_space<vmem>>, %arg2: memref<16x256xbf16, #tpu.memory_space<vmem>>, %arg3: memref<32x1xf32, #tpu.memory_space<vmem>>, %arg4: memref<32x256xbf16, #tpu.memory_space<vmem>>) attributes {dimension_semantics = [#tpu.dimension_semantics<parallel>], iteration_bounds = array<i64: 1>, scalar_prefetch = 0 : i64, scratch_operands = 0 : i64, tpu.core_type = #tpu.core_type<tc>, window_params = [{pipeline_mode = #tpu.pipeline_mode<synchronous>, transform_indices = @transform_0, window_bounds = array<i64: 32, 16>}, {transform_indices = @transform_1, window_bounds = array<i64: 16, 256>}, {pipeline_mode = #tpu.pipeline_mode<synchronous>, transform_indices = @transform_2, window_bounds = array<i64: 32, 1>}, {transform_indices = @transform_3, window_bounds = array<i64: 32, 256>}]} {
    %c0 = arith.constant 0 : index
    %c0_0 = arith.constant 0 : index
    %0 = vector.load %arg1[%c0, %c0_0] : memref<32x16xbf16, #tpu.memory_space<vmem>>, vector<32x16xbf16>
    %c0_1 = arith.constant 0 : index
    %c0_2 = arith.constant 0 : index
    %1 = vector.load %arg2[%c0_1, %c0_2] : memref<16x256xbf16, #tpu.memory_space<vmem>>, vector<16x256xbf16>
    %cst = arith.constant dense<0.000000e+00> : vector<32x256xf32>
    %2 = tpu.matmul %0, %1, %cst {dimension_numbers = #tpu.dot_dimension_numbers<[1], [0], [0], [1], [0, 0, 1, 1], [], []>} : vector<32x16xbf16>, vector<16x256xbf16>, vector<32x256xf32> -> vector<32x256xf32>
    %c0_3 = arith.constant 0 : index
    %c0_4 = arith.constant 0 : index
    %3 = vector.load %arg3[%c0_3, %c0_4] : memref<32x1xf32, #tpu.memory_space<vmem>>, vector<32x1xf32>
    %4 = vector.broadcast %3 : vector<32x1xf32> to vector<32x256xf32>
    %5 = arith.addf %2, %4 : vector<32x256xf32>
    %cst_5 = arith.constant 0.000000e+00 : f32
    %6 = vector.broadcast %cst_5 : f32 to vector<32x256xf32>
    %7 = arith.maximumf %5, %6 : vector<32x256xf32>
    %8 = arith.truncf %7 : vector<32x256xf32> to vector<32x256xbf16>
    %c0_6 = arith.constant 0 : index
    %c0_7 = arith.constant 0 : index
    %9 = vector.load %arg4[%c0_6, %c0_7] : memref<32x256xbf16, #tpu.memory_space<vmem>>, vector<32x256xbf16>
    tpu.vector_store %arg4[%c0_6, %c0_7], %8 {strides = array<i32>} : memref<32x256xbf16, #tpu.memory_space<vmem>>, vector<32x256xbf16>,
    return
  }
  func.func @transform_0(%arg0: i32) -> (i32, i32) {
    %c0_i32 = arith.constant 0 : i32
    %c0_i32_0 = arith.constant 0 : i32
    %c0_i32_1 = arith.constant 0 : i32
    return %c0_i32, %c0_i32_0 : i32, i32
  }
  func.func @transform_1(%arg0: i32) -> (i32, i32) {
    %c0_i32 = arith.constant 0 : i32
    %c0_i32_0 = arith.constant 0 : i32
    return %c0_i32, %arg0 : i32, i32
  }
  func.func @transform_2(%arg0: i32) -> (i32, i32) {
    %c0_i32 = arith.constant 0 : i32
    %c0_i32_0 = arith.constant 0 : i32
    %c0_i32_1 = arith.constant 0 : i32
    return %c0_i32, %c0_i32_0 : i32, i32
  }
  func.func @transform_3(%arg0: i32) -> (i32, i32) {
    %c0_i32 = arith.constant 0 : i32
    %c0_i32_0 = arith.constant 0 : i32
    return %c0_i32, %arg0 : i32, i32
  }
}

module attributes {stable_mosaic.version = 11 : i64} {
  func.func @_matmul_bias_act_kernel(%arg0: i32, %arg1: memref<4x32xbf16, #tpu.memory_space<vmem>>, %arg2: memref<32x512xbf16, #tpu.memory_space<vmem>>, %arg3: memref<4x1xf32, #tpu.memory_space<vmem>>, %arg4: memref<4x512xf32, #tpu.memory_space<vmem>>) attributes {dimension_semantics = [#tpu.dimension_semantics<parallel>], iteration_bounds = array<i64: 2>, scalar_prefetch = 0 : i64, scratch_operands = 0 : i64, tpu.core_type = #tpu.core_type<tc>, window_params = [{pipeline_mode = #tpu.pipeline_mode<synchronous>, transform_indices = @transform_0, window_bounds = array<i64: 4, 32>}, {transform_indices = @transform_1, window_bounds = array<i64: 32, 512>}, {pipeline_mode = #tpu.pipeline_mode<synchronous>, transform_indices = @transform_2, window_bounds = array<i64: 4, 1>}, {transform_indices = @transform_3, window_bounds = array<i64: 4, 512>}]} {
    %c0 = arith.constant 0 : index
    %c0_0 = arith.constant 0 : index
    %0 = vector.load %arg1[%c0, %c0_0] : memref<4x32xbf16, #tpu.memory_space<vmem>>, vector<4x32xbf16>
    %c0_1 = arith.constant 0 : index
    %c0_2 = arith.constant 0 : index
    %1 = vector.load %arg2[%c0_1, %c0_2] : memref<32x512xbf16, #tpu.memory_space<vmem>>, vector<32x512xbf16>
    %cst = arith.constant dense<0.000000e+00> : vector<4x512xf32>
    %2 = tpu.matmul %0, %1, %cst {dimension_numbers = #tpu.dot_dimension_numbers<[1], [0], [0], [1], [0, 0, 1, 1], [], []>} : vector<4x32xbf16>, vector<32x512xbf16>, vector<4x512xf32> -> vector<4x512xf32>
    %c0_3 = arith.constant 0 : index
    %c0_4 = arith.constant 0 : index
    %3 = vector.load %arg3[%c0_3, %c0_4] : memref<4x1xf32, #tpu.memory_space<vmem>>, vector<4x1xf32>
    %4 = vector.broadcast %3 : vector<4x1xf32> to vector<4x512xf32>
    %5 = arith.addf %2, %4 : vector<4x512xf32>
    %cst_5 = arith.constant 0.000000e+00 : f32
    %6 = vector.broadcast %cst_5 : f32 to vector<4x512xf32>
    %7 = arith.subf %6, %5 : vector<4x512xf32>
    %8 = math.exp %7 : vector<4x512xf32>
    %cst_6 = arith.constant 1.000000e+00 : f32
    %9 = vector.broadcast %cst_6 : f32 to vector<4x512xf32>
    %10 = arith.addf %9, %8 : vector<4x512xf32>
    %cst_7 = arith.constant 1.000000e+00 : f32
    %11 = vector.broadcast %cst_7 : f32 to vector<4x512xf32>
    %12 = arith.divf %11, %10 : vector<4x512xf32>
    %c0_8 = arith.constant 0 : index
    %c0_9 = arith.constant 0 : index
    %13 = vector.load %arg4[%c0_8, %c0_9] : memref<4x512xf32, #tpu.memory_space<vmem>>, vector<4x512xf32>
    tpu.vector_store %arg4[%c0_8, %c0_9], %12 {strides = array<i32>} : memref<4x512xf32, #tpu.memory_space<vmem>>, vector<4x512xf32>,
    return
  }
  func.func @transform_0(%arg0: i32) -> (i32, i32) {
    %c0_i32 = arith.constant 0 : i32
    %c0_i32_0 = arith.constant 0 : i32
    %c0_i32_1 = arith.constant 0 : i32
    return %c0_i32, %c0_i32_0 : i32, i32
  }
  func.func @transform_1(%arg0: i32) -> (i32, i32) {
    %c0_i32 = arith.constant 0 : i32
    %c0_i32_0 = arith.constant 0 : i32
    return %c0_i32, %arg0 : i32, i32
  }
  func.func @transform_2(%arg0: i32) -> (i32, i32) {
    %c0_i32 = arith.constant 0 : i32
    %c0_i32_0 = arith.constant 0 : i32
    %c0_i32_1 = arith.constant 0 : i32
    return %c0_i32, %c0_i32_0 : i32, i32
  }
  func.func @transform_3(%arg0: i32) -> (i32, i32) {
    %c0_i32 = arith.constant 0 : i32
    %c0_i32_0 = arith.constant 0 : i32
    return %c0_i32, %arg0 : i32, i32
  }
}

</mosaic_0001>

<bundles_post_ra>
// kernel: tile.12
= control target key start
LH: loop header
LB: loop body
LE: loop exit
PB: predicated region body
PF: predicated region fallthrough
CT: control target
= control target key end

     0   :  { %s22_s0 = inlined_call_operand.vmem [shape: f32[8], index: 0, kind: input, shape index: {}]   ;;  %s23_s1 = inlined_call_operand.vmem [shape: f32[4,8], index: 1, kind: output, shape index: {}]  }
   0x1   :  { %v4_v0 = vld [vmem:[%s22_s0] ss:$0 sm:$0xff] }
   0x2   :  { %5 = vst [vmem:[%s23_s1] sm:$0xf] %v4_v0 }

// kernel: tile.0
= control target key start
LH: loop header
LB: loop body
LE: loop exit
PB: predicated region body
PF: predicated region fallthrough
CT: control target
= control target key end

     0   :  { %s66_s8 = smov 125   ;;  %vm7_vm0 = vcmask 7168   ;;  %s67_s11 = smov 126   ;;  %s117_s0 = inlined_call_operand.vmem [shape: f32[4,8], index: 0, kind: input, shape index: {}]   ;;  %s118_s1 = inlined_call_operand.vmem [shape: f32[32,1], index: 1, kind: output, shape index: {}]  }
   0x1   :  { %v4_v0 = vld [vmem:[%s117_s0] sm:$0xf]  ;;  %s65_s0 = smov 127   ;;  %s68_s12 = smov 124  }
   0x2   :  { %5 = vst [vmem:[#allocation0] sm:$0xf] %v4_v0  ;;  %s69_s13 = smov 123   ;;  %s70_s14 = smov 122  }
   0x3   :  { %s71_s15 = smov 121  }
   0x9   :  { %v9_v1 = vld [vmem:[#allocation0] sm:$0xf]  }
   0xa   :  { %v21_v2 = vld [vmem:[#allocation0] sm:$0xf]   ;;  %10 = vrot.lane.b32.xlu0 %v9_v1, %s65_s0 }
   0xb   :  { %22 = vrot.lane.b32.xlu1 %v21_v2, %s66_s8  ;;  %v15_v3 = vld [vmem:[#allocation0] sm:$0xf]  }
   0xc   :  { %v27_v4 = vld [vmem:[#allocation0] sm:$0xf]  }
   0xd   :  { %v6_v5 = vld [vmem:[#allocation0] sm:$0xf]  }
   0xe   :  { %8 = vst.msk [vmem:[%s118_s1] ss:$8 sm:$0xf] %vm7_vm0, %v6_v5   ;;  %16 = vrot.lane.b32.xlu0 %v15_v3, %s67_s11  ;;  %v33_v6 = vld [vmem:[#allocation0] sm:$0xf]  }
   0xf   :  { %28 = vrot.lane.b32.xlu1 %v27_v4, %s68_s12  ;;  %v39_v7 = vld [vmem:[#allocation0] sm:$0xf]  }
  0x10   :  { %v45_v8 = vld [vmem:[#allocation0] sm:$0xf]  }
  0x12   :  { %34 = vrot.lane.b32.xlu0 %v33_v6, %s69_s13 }
  0x13   :  { %40 = vrot.lane.b32.xlu1 %v39_v7, %s70_s14 }
  0x16   :  { %46 = vrot.lane.b32.xlu0 %v45_v8, %s71_s15 }
  0x7c   :  { %v11_v9 = vpop.permute.xlu0 %10  }
  0x7d   :  { %v23_v10 = vpop.permute.xlu1 %22   ;;  %51 = vst.msk [vmem:[%s118_s1 + $0x1] ss:$8 sm:$0xf] %vm7_vm0, %v11_v9  }
  0x7e   :  { %53 = vst.msk [vmem:[%s118_s1 + $0x3] ss:$8 sm:$0xf] %vm7_vm0, %v23_v10  }
  0x80   :  { %v17_v11 = vpop.permute.xlu0 %16  }
  0x81   :  { %v29_v12 = vpop.permute.xlu1 %28   ;;  %52 = vst.msk [vmem:[%s118_s1 + $0x2] ss:$8 sm:$0xf] %vm7_vm0, %v17_v11  }
  0x82   :  { %54 = vst.msk [vmem:[%s118_s1 + $0x4] ss:$8 sm:$0xf] %vm7_vm0, %v29_v12  }
  0x84   :  { %v35_v13 = vpop.permute.xlu0 %34  }
  0x85   :  { %v41_v14 = vpop.permute.xlu1 %40   ;;  %55 = vst.msk [vmem:[%s118_s1 + $0x5] ss:$8 sm:$0xf] %vm7_vm0, %v35_v13  }
  0x86   :  { %56 = vst.msk [vmem:[%s118_s1 + $0x6] ss:$8 sm:$0xf] %vm7_vm0, %v41_v14  }
  0x88   :  { %v47_v15 = vpop.permute.xlu0 %46  }
  0x89   :  { %57 = vst.msk [vmem:[%s118_s1 + $0x7] ss:$8 sm:$0xf] %vm7_vm0, %v47_v15  }

// kernel: decoder_forward.2
= control target key start
LH: loop header
LB: loop body
LE: loop exit
PB: predicated region body
PF: predicated region fallthrough
CT: control target
= control target key end

     0   :  { %v189_v1 = vmov 0   ;;  %vm65_vm0 = vcmask 130048   ;;  %s246_s1 = inlined_call_operand.vmem [shape: bf16[16,256], index: 1, kind: input, shape index: {}]   ;;  %s247_s0 = inlined_call_operand.vmem [shape: bf16[32,16], index: 0, kind: input, shape index: {}]   ;;  %s248_s2 = inlined_call_operand.vmem [shape: f32[32,1], index: 2, kind: input, shape index: {}]   ;;  %s249_s3 = inlined_call_operand.vmem [shape: bf16[32,256], index: 3, kind: output, shape index: {}]  }
   0x1   :  { %v184_v0 = vld [vmem:[%s246_s1 + $0x4] ss:$8 sps:$4 sm:$0xff]   ;;  %104 = vmatprep.mubr.bf16.mxu0 %v189_v1  ;;  %114 = vmatprep.mubr.bf16.mxu1 %v189_v1  ;;  %v186_v2 = vld [vmem:[%s246_s1] ss:$8 sps:$4 sm:$0xff]   ;;  %v23_v5 = vld [vmem:[%s248_s2 + $0x10] sm:$0xff] }
   0x2   :  { %183 = vset.pattern.permute.xlu1 %v189_v1  ;;  %182 = vset.pattern.permute.xlu0 %v189_v1  ;;  %v187_v3 = vld [vmem:[%s247_s0] sm:$0xff]   ;;  %v188_v4 = vld [vmem:[%s247_s0 + $0x8] sm:$0xff]   ;;  %v24_v7 = vld [vmem:[%s248_s2 + $0x18] sm:$0xff] }
   0x3   :  { %72 = vmatprep.subr.bf16.mxu0 %v184_v0  ;;  %179 = vmatprep.subr.bf16.mxu1 %v184_v0  ;;  %v21_v6 = vld [vmem:[%s248_s2] sm:$0xff]  ;;  %v22_v8 = vld [vmem:[%s248_s2 + $0x8] sm:$0xff] }
   0x4   :  { %73 = vmatpush1.bf16.msra.mxu0 %v186_v2  ;;  %180 = vmatpush1.bf16.msra.mxu1 %v186_v2 }
   0x5   :  { %37 = vperm.xlu1 %183, %v23_v5   ;;  %27 = vperm.xlu0 %182, %v21_v6  }
   0x7   :  { %169 = vmatmul.mubr.msk.bf16.vlgmr.msra.gmra.mrb[0].mxu0 %vm65_vm0, %v187_v3  ;;  %170 = vmatmul.mubr.msk.bf16.vlgmr.msra.gmra.mrb[0].mxu1 %vm65_vm0, %v188_v4 }
   0x9   :  { %42 = vperm.xlu1 %183, %v24_v7   ;;  %32 = vperm.xlu0 %182, %v22_v8  }
  0x84   :  { %v38_v9 = vpop.permute.xlu1 %37  ;;  %v28_v10 = vpop.permute.xlu0 %27 }
  0x88   :  { %v43_v11 = vpop.permute.xlu1 %42  ;;  %v33_v12 = vpop.permute.xlu0 %32 }
  0xda   :  { %v106_v13 = vpop.f32.mrb[0].mxu0  ;;  %v116_v14 = vpop.f32.mrb[0].mxu1 }
  0xdb   :  { %v107_v15 = vadd.f32 %v106_v13, %v28_v10  ;;  %v117_v16 = vadd.f32 %v116_v14, %v38_v9  ;;  %v108_v17 = vpop.f32.mrb[1].mxu0  ;;  %v118_v18 = vpop.f32.mrb[1].mxu1 }
  0xdc   :  { %v109_v19 = vadd.f32 %v108_v17, %v28_v10  ;;  %v119_v20 = vadd.f32 %v118_v18, %v38_v9  ;;  %v110_v21 = vpop.f32.mrb[2].mxu0  ;;  %v120_v22 = vpop.f32.mrb[2].mxu1 }
  0xdd   :  { %v125_v23 = vmax.f32 %v107_v15, 0.0  ;;  %v129_v24 = vmax.f32 %v117_v16, 0.0  ;;  %v111_v25 = vadd.f32 %v110_v21, %v33_v12  ;;  %v121_v26 = vadd.f32 %v120_v22, %v43_v11  ;;  %v112_v27 = vpop.f32.mrb[3].mxu0  ;;  %v122_v28 = vpop.f32.mrb[3].mxu1 }
  0xde   :  { %v126_v29 = vmax.f32 %v109_v19, 0.0  ;;  %v130_v30 = vmax.f32 %v119_v20, 0.0  ;;  %v113_v31 = vadd.f32 %v112_v27, %v33_v12  ;;  %v123_v32 = vadd.f32 %v122_v28, %v43_v11 }
  0xdf   :  { %v127_v33 = vmax.f32 %v111_v25, 0.0  ;;  %v131_v34 = vmax.f32 %v121_v26, 0.0 }
  0xe0   :  { %v175_v35 = vpack.c.bf16 %v126_v29, %v125_v23  ;;  %v177_v36 = vpack.c.bf16 %v130_v30, %v129_v24  ;;  %v128_v37 = vmax.f32 %v113_v31, 0.0  ;;  %v132_v38 = vmax.f32 %v123_v32, 0.0 }
  0xe2   :  { %157 = vst [vmem:[%s249_s3] sm:$0xff] %v175_v35  ;;  %159 = vst [vmem:[%s249_s3 + $0x10] sm:$0xff] %v177_v36  ;;  %v176_v39 = vpack.c.bf16 %v128_v37, %v127_v33  ;;  %v178_v40 = vpack.c.bf16 %v132_v38, %v131_v34 }
  0xe4   :  { %158 = vst [vmem:[%s249_s3 + $0x8] sm:$0xff] %v176_v39  ;;  %160 = vst [vmem:[%s249_s3 + $0x18] sm:$0xff] %v178_v40 }

// kernel: tile.17
= control target key start
LH: loop header
LB: loop body
LE: loop exit
PB: predicated region body
PF: predicated region fallthrough
CT: control target
= control target key end

     0   :  { %s20_s0 = inlined_call_operand.<no memory space> [shape: f32[], index: 0, kind: input, shape index: {}]   ;;  %s21_s1 = inlined_call_operand.vmem [shape: f32[4,1], index: 1, kind: output, shape index: {}]  }
   0x1   :  { %v2_v0 = vstv %s20_s0 }
   0x2   :  { %3 = vst [vmem:[%s21_s1] sm:$0xf] %v2_v0 }

// kernel: decoder_forward.3
= control target key start
LH: loop header
LB: loop body
LE: loop exit
PB: predicated region body
PF: predicated region fallthrough
CT: control target
= control target key end

     0   :  { %s568_s12 = smov 0   ;;  %s570_s13 = smov 0   ;;  %s626_s0 = inlined_call_operand.vmem [shape: bf16[4,32], index: 0, kind: input, shape index: {}]   ;;  %s627_s1 = inlined_call_operand.vmem [shape: bf16[32,1024], index: 1, kind: input, shape index: {}]   ;;  %s628_s2 = inlined_call_operand.vmem [shape: f32[4,1], index: 2, kind: input, shape index: {}]   ;;  %s629_s3 = inlined_call_operand.vmem [shape: f32[4,1024], index: 3, kind: output, shape index: {}]  }
   0x1   :  { %s572_s14 = smov 0  }
   0x2 LB: > { %s445_s15 = sadd.s32 4294967295, %s545_s14   ;;  %s585_s16 = sadd.s32 1, %s545_s14   ;;  %s545_s14 = sphi %s572_s14, %s632_s14   ;;  %s541_s13 = sphi %s570_s13, %s631_s13   ;;  %s537_s12 = sphi %s568_s12, %s630_s12  }
   0x3   : > { %s38_s17 = ssub.s32 %s545_s14, %s585_s16  ;;  %s41_s18 = sadd.s32 1, %s541_s13 }
   0x4   : > { %p39_p0 = scmp.eq.s32.totalorder %s38_s17, 0  ;;  %p48_p1 = scmp.ne.s32.totalorder %s541_s13, %s537_s12 }
   0x5   : > { %p49_p2 = scmp.eq.s32.totalorder %s545_s14, 0  ;;  %p448_p4 = scmp.ge.s32.totalorder %s545_s14, 2 }
   0x6   : > { %s594_s19 = scalar_select %p39_p0, %s541_s13, %s41_s18  }
   0x7   : > { %p50_p3 = por %p49_p2, %p48_p1  ;;  %127 = sbr.rel (%p448_p4) target bundleno = 22 (0x16), region = 24 }
   0xe   : > { %130 = sbr.rel (!%p50_p3) target bundleno = 22 (0x16), region = 28  ;;  %s132_s20 = sand.u32 (%p50_p3), 1, %s541_s13  }
   0xf   : > { %s468_s21 = sshll.u32 (%p50_p3), %s545_s14, 4  ;;  %s449_s22 = sshll.u32 (%p50_p3), %s132_s20, 6 }
  0x10   : > { %s137_s25 = scalar_lea.vmem (%p50_p3), %s627_s1, %s468_s21  ;;  %s134_s26 = scalar_lea.vmem (%p50_p3), [#allocation2], %s449_s22 }
  0x11   : > { %v150_v0 = vld [vmem:[%s137_s25] sm:$0xff] (%p50_p3)  ;;  %v152_v1 = vld [vmem:[%s137_s25 + $0x8] sm:$0xff] (%p50_p3) }
  0x12   : > { %v154_v2 = vld [vmem:[%s137_s25 + $0x20] sm:$0xff] (%p50_p3)  ;;  %151 = vst [vmem:[%s134_s26] sm:$0xff] (%p50_p3), %v150_v0  ;;  %153 = vst [vmem:[%s134_s26 + $0x8] sm:$0xff] (%p50_p3), %v152_v1  ;;  %v156_v3 = vld [vmem:[%s137_s25 + $0x28] sm:$0xff] (%p50_p3) }
  0x13   : > { %155 = vst [vmem:[%s134_s26 + $0x10] sm:$0xff] (%p50_p3), %v154_v2  ;;  %v158_v4 = vld [vmem:[%s137_s25 + $0x40] sm:$0xff] (%p50_p3)  ;;  %v160_v5 = vld [vmem:[%s137_s25 + $0x48] sm:$0xff] (%p50_p3)  ;;  %157 = vst [vmem:[%s134_s26 + $0x18] sm:$0xff] (%p50_p3), %v156_v3 }
  0x14   : > { %159 = vst [vmem:[%s134_s26 + $0x20] sm:$0xff] (%p50_p3), %v158_v4  ;;  %161 = vst [vmem:[%s134_s26 + $0x28] sm:$0xff] (%p50_p3), %v160_v5  ;;  %v162_v6 = vld [vmem:[%s137_s25 + $0x60] sm:$0xff] (%p50_p3)  ;;  %v164_v7 = vld [vmem:[%s137_s25 + $0x68] sm:$0xff] (%p50_p3) }
  0x15   : > { %163 = vst [vmem:[%s134_s26 + $0x30] sm:$0xff] %v162_v6  ;;  %165 = vst [vmem:[%s134_s26 + $0x38] sm:$0xff] %v164_v7 }
  0x16 PF: > { %p452_p5 = scmp.ge.s32.totalorder %s545_s14, 1  ;;  %p170_p6 = scmp.lt.s32.totalorder %s545_s14, 3 }
  0x18   : > { %p171_p7 = pnand %p452_p5, %p170_p6 }
  0x19   : > { %s177_s27 = sand.u32 (!%p171_p7), 1, %s537_s12   ;;  %v547_v8 = vmov (!%p171_p7), 0   ;;  %v217_v9 = vld [vmem:[%s628_s2] sm:$0xf] (!%p171_p7)  ;;  %vm263_vm0 = vcmask (!%p171_p7), 261120   ;;  %s454_s7 = sshll.u32 (!%p171_p7), %s445_s15, 2 }
  0x1a   : > { %174 = sbr.rel (%p171_p7) target bundleno = 285 (0x11d), region = 51  ;;  %s453_s28 = sshll.u32 (!%p171_p7), %s177_s27, 6  ;;  %299 = vmatprep.mubr.bf16.mxu0 (!%p171_p7), %v547_v8  ;;  %340 = vmatprep.mubr.bf16.mxu1 (!%p171_p7), %v547_v8  ;;  %v208_v18 = vld [vmem:[%s626_s0] sm:$0x3] (!%p171_p7) }
  0x1b   : > { %494 = vset.pattern.permute.xlu0 (!%p171_p7), %v547_v8  ;;  %s179_s4 = scalar_lea.vmem (!%p171_p7), [#allocation2], %s453_s28  ;;  %p202_p8 = scmp.lt.s32.totalorder (!%p171_p7), %s454_s7, 7 }
  0x1c   : > { %v495_v10 = vld [vmem:[%s179_s4 + $0x4] ss:$16 sps:$4 sm:$0xff] (!%p171_p7)   ;;  %220 = vperm.xlu0 (!%p171_p7), %494, %v217_v9   ;;  %v497_v11 = vld [vmem:[%s179_s4 + $0xc] ss:$16 sps:$4 sm:$0xff] (!%p171_p7)   ;;  %v499_v12 = vld [vmem:[%s179_s4] ss:$16 sps:$4 sm:$0xff] (!%p171_p7)  }
  0x1d   : > { %267 = vmatprep.subr.bf16.mxu0 (!%p171_p7), %v495_v10  ;;  %v500_v13 = vld [vmem:[%s179_s4 + $0x8] ss:$16 sps:$4 sm:$0xff] (!%p171_p7)   ;;  %308 = vmatprep.subr.bf16.mxu1 (!%p171_p7), %v497_v11  ;;  %v501_v14 = vld [vmem:[%s179_s4 + $0x24] ss:$16 sps:$4 sm:$0xff] (!%p171_p7)   ;;  %v503_v15 = vld [vmem:[%s179_s4 + $0x2c] ss:$16 sps:$4 sm:$0xff] (!%p171_p7)  }
  0x1e   : > { %268 = vmatpush1.bf16.msra.mxu0 (!%p171_p7), %v499_v12  ;;  %309 = vmatpush1.bf16.msra.mxu1 (!%p171_p7), %v500_v13  ;;  %v505_v16 = vld [vmem:[%s179_s4 + $0x20] ss:$16 sps:$4 sm:$0xff] (!%p171_p7)   ;;  %v506_v17 = vld [vmem:[%s179_s4 + $0x28] ss:$16 sps:$4 sm:$0xff] (!%p171_p7)  }
  0x1f   : > { %269 = vmatprep.subr.bf16.mxu0 (!%p171_p7), %v501_v14  ;;  %310 = vmatprep.subr.bf16.mxu1 (!%p171_p7), %v503_v15 }
  0x21   : > { %s634_s7 = smov (!%p202_p8, %s454_s7), 7 }
  0x22   : > { %270 = vmatpush1.bf16.msra.mxu0 %v505_v16  ;;  %311 = vmatpush1.bf16.msra.mxu1 %v506_v17  ;;  %s455_s8 = sshll.u32 %s634_s7, 2 }
  0x23   : > { %s205_s11 = scalar_lea.vmem %s629_s3, %s455_s8 }
  0x25   : > { %464 = vmatmul.mubr.msk.bf16.vlgmr.msra.gmra.mrb[0].mxu0 %vm263_vm0, %v208_v18  ;;  %465 = vmatmul.mubr.msk.bf16.vlgmr.msra.gmra.mrb[0].mxu1 %vm263_vm0, %v208_v18 }
  0x9b   : > { %v221_v19 = vpop.permute.xlu0 %220 }
  0xf8   : > { %v301_v20 = vpop.f32.mrb[0].mxu0  ;;  %v342_v21 = vpop.f32.mrb[0].mxu1 }
  0xf9   : > { %v302_v22 = vadd.f32 %v301_v20, %v221_v19  ;;  %v343_v23 = vadd.f32 %v342_v21, %v221_v19  ;;  %v303_v24 = vpop.f32.mrb[1].mxu0  ;;  %v344_v25 = vpop.f32.mrb[1].mxu1 }
  0xfa   : > { %v304_v26 = vadd.f32 %v303_v24, %v221_v19  ;;  %v345_v27 = vadd.f32 %v344_v25, %v221_v19  ;;  %v305_v28 = vpop.f32.mrb[2].mxu0  ;;  %v346_v29 = vpop.f32.mrb[2].mxu1 }
  0xfb   : > { %v349_v30 = vsub.f32 0.0, %v302_v22  ;;  %v351_v31 = vsub.f32 0.0, %v343_v23  ;;  %v306_v32 = vpop.f32.mrb[3].mxu0  ;;  %v347_v33 = vpop.f32.mrb[3].mxu1 }
  0xfc   : > { %v350_v34 = vsub.f32 0.0, %v304_v26  ;;  %v352_v35 = vsub.f32 0.0, %v345_v27 }
  0xfd   : > { %v353_v36 = vmul.f32 1.442695, %v349_v30  ;;  %v357_v37 = vmul.f32 1.442695, %v351_v31 }
  0xfe   : > { %v355_v38 = vmul.f32 1.442695, %v350_v34  ;;  %v359_v39 = vmul.f32 1.442695, %v352_v35 }
  0xff   : > { %507 = vpow2.f32 %v353_v36 }
 0x100   : > { %509 = vpow2.f32 %v357_v37 }
 0x101   : > { %511 = vpow2.f32 %v355_v38 }
 0x102   : > { %513 = vpow2.f32 %v359_v39 }
 0x109   : > { %v508_v40 = vpop.eup %507 }
 0x10a   : > { %v510_v41 = vpop.eup %509  ;;  %v361_v42 = vadd.f32 1.0, %v508_v40 }
 0x10b   : > { %v512_v43 = vpop.eup %511  ;;  %v363_v44 = vadd.f32 1.0, %v510_v41 }
 0x10c   : > { %v514_v45 = vpop.eup %513  ;;  %515 = vrcp.f32 %v361_v42  ;;  %v362_v46 = vadd.f32 1.0, %v512_v43 }
 0x10d   : > { %517 = vrcp.f32 %v363_v44  ;;  %v364_v47 = vadd.f32 1.0, %v514_v45 }
 0x10e   : > { %519 = vrcp.f32 %v362_v46 }
 0x10f   : > { %521 = vrcp.f32 %v364_v47 }
 0x116   : > { %v516_v48 = vpop.eup %515 }
 0x117   : > { %v518_v49 = vpop.eup %517 }
 0x118   : > { %v520_v50 = vpop.eup %519 }
 0x119   : > { %v522_v51 = vpop.eup %521  ;;  %v377_v52 = vcombine.low %v516_v48, %v520_v50 }
 0x11a   : > { %v378_v53 = vcombine.low %v518_v49, %v522_v51 }
 0x11b   : > { %381 = vst [vmem:[%s205_s11] sm:$0xff] %v377_v52 }
 0x11c   : > { %382 = vst [vmem:[%s205_s11 + $0x8] sm:$0xff] %v378_v53 }
 0x11d PF: > { %p10_p9 = scmp.ge.s32.totalorder %s585_s16, 4   ;;  %s630_s12 = smov %s541_s13 }
 0x11e   : > { %s631_s13 = smov %s594_s19  ;;  %s632_s14 = smov %s585_s16 }
 0x11f   :  { %12 = sbr.rel (!%p10_p9) target bundleno = 2 (0x2), region = 90 }

</bundles_post_ra>
